<compile_context>
chip_gen: v7x
topology: tpu7x:2x2x1
jax: 0.10.0
libtpu: 0.0.40
codegen_flags: <defaults>
</compile_context>

<pallas_src>
import jax
import jax.numpy as jnp
from jax.experimental import pallas as pl
from jax.experimental.pallas import tpu as pltpu


def _round_up(x, m):
    return ((x + m - 1) // m) * m


def _pick_tile(dim, base, max_tile):
    """Choose (tile, padded_dim).

    tile is a multiple of `base`, padded_dim a multiple of tile.  Padding is
    kept minimal (next multiple of `base`) unless the divisor search would
    leave only tiny tiles, in which case we pad a bit more instead of running
    many small grid steps.
    """
    pad = _round_up(dim, base)
    if pad <= max_tile:
        return pad, pad
    t = (max_tile // base) * base
    while t >= base:
        if pad % t == 0:
            break
        t -= base
    if t >= max(base, max_tile // 4):
        return t, pad
    tile = (max_tile // base) * base
    return tile, _round_up(dim, tile)


def _linear_bias_kernel(x_ref, w_ref, b_ref, o_ref):
    # x_ref: (tm, tk) bf16 activations
    # w_ref: (tk, tn) bf16 weight tile in native (K, N) layout
    # b_ref: (1, tn)  f32 bias tile
    # o_ref: (tm, tn) f32 logits tile -- doubles as the accumulator across k
    k = pl.program_id(2)

    @pl.when(k == 0)
    def _init():
        # Fuse the bias add into accumulator initialization.
        o_ref[...] = jnp.broadcast_to(b_ref[...], o_ref.shape)

    # bf16 x bf16 -> f32 accumulate: native single-pass MXU matmul, no RHS
    # transpose inside the loop (weight already (K, N)).
    o_ref[...] += jnp.dot(x_ref[...], w_ref[...],
                          preferred_element_type=jnp.float32)


def classification_forward(x, weight, bias, *, tm_max=512, tn_max=1024,
                           tk_max=1024, operand_dtype=jnp.bfloat16):
    """Equivalent of Classification.forward.

    x:      (B, embed_dim)
    weight: (num_classes, embed_dim)   -- PyTorch nn.Linear layout
    bias:   (num_classes,)
    returns (B, num_classes) float32 logits
    """
    B, D = x.shape
    C, D_w = weight.shape
    assert D == D_w, (D, D_w)

    # Tiles: sublane-aligned batch tile, lane-dense class / contraction tiles.
    # tm covers the whole padded batch when it fits, so the weight streams from
    # HBM exactly once (this kernel is weight-HBM-bound for small batches).
    tm, B_pad = _pick_tile(B, 8, tm_max)
    tn, C_pad = _pick_tile(C, 128, tn_max)
    tk, D_pad = _pick_tile(D, 128, tk_max)

    # bf16 operands, f32 accumulation.  The one-time weight transpose to the
    # native (K, N) layout is done on the bf16 copy (half-size rewrite) and is
    # amortized across calls when the wrapper is jitted with constant weights.
    x_c = x.astype(operand_dtype)
    w_t = weight.astype(operand_dtype).T            # (D, C)

    x_p = x_c if (B_pad == B and D_pad == D) else jnp.pad(
        x_c, ((0, B_pad - B), (0, D_pad - D)))
    w_p = w_t if (D_pad == D and C_pad == C) else jnp.pad(
        w_t, ((0, D_pad - D), (0, C_pad - C)))
    b_p = bias if C_pad == C else jnp.pad(bias, (0, C_pad - C))
    b_p = b_p.astype(jnp.float32).reshape(1, C_pad)

    grid = (B_pad // tm, C_pad // tn, D_pad // tk)

    op_size = jnp.dtype(operand_dtype).itemsize
    cost = pl.CostEstimate(
        flops=2 * B_pad * D_pad * C_pad,
        transcendentals=0,
        bytes_accessed=(
            op_size * B_pad * D_pad * (C_pad // tn)      # x re-read per class tile
            + op_size * D_pad * C_pad * (B_pad // tm)    # weight re-read per batch tile
            + 4 * C_pad * (B_pad // tm)                  # bias
            + 4 * B_pad * C_pad))                        # logits writeback

    # Double-buffered inputs + f32 output-block accumulator; keep a safe limit
    # that works on v5e (16 MiB default scoped) through v7x (64 MiB physical).
    vmem_bytes = 2 * (tm * tk * op_size + tk * tn * op_size
                      + tm * tn * 4 + tn * 4)
    vmem_limit = min(64 * 1024 * 1024, max(32 * 1024 * 1024, 2 * vmem_bytes))

    out = pl.pallas_call(
        _linear_bias_kernel,
        out_shape=jax.ShapeDtypeStruct((B_pad, C_pad), jnp.float32),
        grid_spec=pltpu.PrefetchScalarGridSpec(
            num_scalar_prefetch=0,
            grid=grid,
            in_specs=[
                pl.BlockSpec((tm, tk), lambda i, j, k: (i, k)),   # x
                pl.BlockSpec((tk, tn), lambda i, j, k: (k, j)),   # weight (K, N)
                pl.BlockSpec((1, tn), lambda i, j, k: (0, j)),    # bias
            ],
            out_specs=pl.BlockSpec((tm, tn), lambda i, j, k: (i, j)),
        ),
        compiler_params=pltpu.CompilerParams(
            dimension_semantics=("parallel", "parallel", "arbitrary"),
            vmem_limit_bytes=vmem_limit),
        cost_estimate=cost,
    )(x_p, w_p, b_p)

    return out[:B, :C]


# TODO(synk): compute_loss / probabilities rely on torch loss objects, argmax
# accuracy bookkeeping and .item(); only the forward (linear head) hot path is
# implemented as a Pallas kernel.


if __name__ == "__main__":
    embed_dim = 512    # module default
    num_classes = 3    # module default
    batch = 16

    key = jax.random.PRNGKey(0)
    kx, kw, kb = jax.random.split(key, 3)

    x = jax.random.normal(kx, (batch, embed_dim), dtype=jnp.float32)
    # Deterministic param init mimicking nn.Linear's uniform(-1/sqrt(D), 1/sqrt(D))
    bound = 1.0 / (embed_dim ** 0.5)
    weight = jax.random.uniform(kw, (num_classes, embed_dim),
                                minval=-bound, maxval=bound, dtype=jnp.float32)
    bias = jax.random.uniform(kb, (num_classes,),
                              minval=-bound, maxval=bound, dtype=jnp.float32)

    logits = classification_forward(x, weight, bias)
    jax.block_until_ready(logits)

    # f32 reference; bf16-operand / f32-accumulate kernel matches to ~1e-2.
    ref = jnp.dot(x, weight.T) + bias
    assert logits.shape == (batch, num_classes)
    max_err = float(jnp.max(jnp.abs(logits - ref)))
    assert jnp.allclose(logits, ref, atol=5e-2, rtol=5e-2), max_err

    print("KERNEL_OK")
</pallas_src>

<mosaic_0001>
module attributes {stable_mosaic.version = 11 : i64} {
  func.func @_linear_bias_kernel(%arg0: i32, %arg1: i32, %arg2: i32, %arg3: memref<16x512xbf16, #tpu.memory_space<vmem>>, %arg4: memref<512x128xbf16, #tpu.memory_space<vmem>>, %arg5: memref<1x128xf32, #tpu.memory_space<vmem>>, %arg6: memref<16x128xf32, #tpu.memory_space<vmem>>) attributes {dimension_semantics = [#tpu.dimension_semantics<parallel>, #tpu.dimension_semantics<parallel>, #tpu.dimension_semantics<arbitrary>], iteration_bounds = array<i64: 1, 1, 1>, scalar_prefetch = 0 : i64, scratch_operands = 0 : i64, tpu.core_type = #tpu.core_type<tc>, window_params = [{transform_indices = @transform_0, window_bounds = array<i64: 16, 512>}, {transform_indices = @transform_1, window_bounds = array<i64: 512, 128>}, {transform_indices = @transform_2, window_bounds = array<i64: 1, 128>}, {transform_indices = @transform_3, window_bounds = array<i64: 16, 128>}]} {
    %c0_i32 = arith.constant 0 : i32
    %0 = arith.cmpi eq, %arg2, %c0_i32 : i32
    %1 = arith.extui %0 : i1 to i32
    %c0_i32_0 = arith.constant 0 : i32
    %2 = arith.cmpi ne, %1, %c0_i32_0 : i32
    scf.if %2 {
      %c0_8 = arith.constant 0 : index
      %c0_9 = arith.constant 0 : index
      %9 = vector.load %arg5[%c0_8, %c0_9] : memref<1x128xf32, #tpu.memory_space<vmem>>, vector<1x128xf32>
      %10 = vector.shape_cast %9 : vector<1x128xf32> to vector<1x128xf32>
      %11 = vector.broadcast %10 : vector<1x128xf32> to vector<16x128xf32>
      %c0_10 = arith.constant 0 : index
      %c0_11 = arith.constant 0 : index
      %12 = vector.load %arg6[%c0_10, %c0_11] : memref<16x128xf32, #tpu.memory_space<vmem>>, vector<16x128xf32>
      tpu.vector_store %arg6[%c0_10, %c0_11], %11 {strides = array<i32>} : memref<16x128xf32, #tpu.memory_space<vmem>>, vector<16x128xf32>,
    } else {
    }
    %c0 = arith.constant 0 : index
    %c0_1 = arith.constant 0 : index
    %3 = vector.load %arg6[%c0, %c0_1] : memref<16x128xf32, #tpu.memory_space<vmem>>, vector<16x128xf32>
    %c0_2 = arith.constant 0 : index
    %c0_3 = arith.constant 0 : index
    %4 = vector.load %arg3[%c0_2, %c0_3] : memref<16x512xbf16, #tpu.memory_space<vmem>>, vector<16x512xbf16>
    %c0_4 = arith.constant 0 : index
    %c0_5 = arith.constant 0 : index
    %5 = vector.load %arg4[%c0_4, %c0_5] : memref<512x128xbf16, #tpu.memory_space<vmem>>, vector<512x128xbf16>
    %cst = arith.constant dense<0.000000e+00> : vector<16x128xf32>
    %6 = tpu.matmul %4, %5, %cst {dimension_numbers = #tpu.dot_dimension_numbers<[1], [0], [0], [1], [0, 0, 1, 1], [], []>} : vector<16x512xbf16>, vector<512x128xbf16>, vector<16x128xf32> -> vector<16x128xf32>
    %7 = arith.addf %3, %6 : vector<16x128xf32>
    %c0_6 = arith.constant 0 : index
    %c0_7 = arith.constant 0 : index
    %8 = vector.load %arg6[%c0_6, %c0_7] : memref<16x128xf32, #tpu.memory_space<vmem>>, vector<16x128xf32>
    tpu.vector_store %arg6[%c0_6, %c0_7], %7 {strides = array<i32>} : memref<16x128xf32, #tpu.memory_space<vmem>>, vector<16x128xf32>,
    return
  }
  func.func @transform_0(%arg0: i32, %arg1: i32, %arg2: i32) -> (i32, i32) {
    %c0_i32 = arith.constant 0 : i32
    return %arg0, %arg2 : i32, i32
  }
  func.func @transform_1(%arg0: i32, %arg1: i32, %arg2: i32) -> (i32, i32) {
    %c0_i32 = arith.constant 0 : i32
    return %arg2, %arg1 : i32, i32
  }
  func.func @transform_2(%arg0: i32, %arg1: i32, %arg2: i32) -> (i32, i32) {
    %c0_i32 = arith.constant 0 : i32
    %c0_i32_0 = arith.constant 0 : i32
    return %c0_i32, %arg1 : i32, i32
  }
  func.func @transform_3(%arg0: i32, %arg1: i32, %arg2: i32) -> (i32, i32) {
    %c0_i32 = arith.constant 0 : i32
    return %arg0, %arg1 : i32, i32
  }
}

</mosaic_0001>

<bundles_post_ra>
// kernel: tpu_custom_call.1
= control target key start
LH: loop header
LB: loop body
LE: loop exit
PB: predicated region body
PF: predicated region fallthrough
CT: control target
= control target key end

     0   :  { %8 = vsyncpa [#allocation3], 0  ;;  %s711_s0 = inlined_call_operand.hbm [shape: bf16[16,512], index: 0, kind: input, shape index: {}]   ;;  %s712_s1 = inlined_call_operand.hbm [shape: bf16[512,128], index: 1, kind: input, shape index: {}]   ;;  %s713_s2 = inlined_call_operand.vmem [shape: f32[1,128], index: 2, kind: input, shape index: {}]   ;;  %s714_s3 = inlined_call_operand.hbm [shape: f32[16,128], index: 3, kind: output, shape index: {}]  }
   0x1   :  { %9 = vsyncpa [#allocation6], 0 }
   0x2   :  { %10 = vsyncpa [#allocation4], 0  ;;  %s643_s12 = smov [#allocation2]   ;;  %s571_s16 = scalar_lea.hbm %s711_s0, 512 }
   0x3   :  { %s16_s13 = sshll.u32 %s643_s12, 4  ;;  %p572_p0 = scmp.ne.s32.totalorder %s711_s0, %s571_s16  ;;  %s17_s13 = int_to_ptr.vmem [resolvable:$true] %s16_s13 }
   0x4   :  { %p575_p1 = scmp.lt.u32.totalorder %s571_s16, %s711_s0 }
   0x6   :  { %p577_p2 = pnand %p575_p1, %p572_p0 }
   0x8   :  { %580 = shalt.err (!%p577_p2)
}
   0x9   :  { %s581_s21 = scalar_lea.vmem %s17_s13, 512  ;;  %p586_p4 = scmp.lt.s32.totalorder %s17_s13, %s17_s13 }
   0xa   :  { %p582_p3 = scmp.ne.s32.totalorder %s17_s13, %s581_s21  ;;  %p587_p5 = scmp.lt.s32.totalorder %s581_s21, %s581_s21 }
   0xc   :  { %p588_p6 = por %p587_p5, %p586_p4 }
   0xe   :  { %p589_p7 = pnand %p588_p6, %p582_p3 }
  0x10   :  { %592 = shalt.err (!%p589_p7)
}
  0x11   :  { %s644_s22 = smov 256   ;;  %s645_s23 = smov 16  }
  0x12   :  { %22 = dma.hbm_to_vmem [thread:$0]  %s711_s0, 512, %s17_s13, [#allocation3], %s644_s22, %s644_s22, %s645_s23  }
  0x13   :  { %s646_s26 = smov [#allocation5]   ;;  %s593_s30 = scalar_lea.hbm %s712_s1, 4096 }
  0x14   :  { %s28_s27 = sshll.u32 %s646_s26, 4  ;;  %p594_p8 = scmp.ne.s32.totalorder %s712_s1, %s593_s30  ;;  %s29_s27 = int_to_ptr.vmem [resolvable:$true] %s28_s27 }
  0x15   :  { %p597_p9 = scmp.lt.u32.totalorder %s593_s30, %s712_s1 }
  0x17   :  { %p599_p10 = pnand %p597_p9, %p594_p8 }
  0x19   :  { %602 = shalt.err (!%p599_p10)
}
  0x1a   :  { %s603_s8 = scalar_lea.vmem %s29_s27, 4096  ;;  %p608_p12 = scmp.lt.s32.totalorder %s29_s27, %s29_s27 }
  0x1b   :  { %p604_p11 = scmp.ne.s32.totalorder %s29_s27, %s603_s8  ;;  %p609_p13 = scmp.lt.s32.totalorder %s603_s8, %s603_s8 }
  0x1d   :  { %p610_p0 = por %p609_p13, %p608_p12 }
  0x1f   :  { %p611_p1 = pnand %p610_p0, %p604_p11 }
  0x21   :  { %614 = shalt.err (!%p611_p1)
}
  0x22   :  { %s647_s0 = smov 64   ;;  %s648_s9 = smov 4  }
  0x23   :  { %34 = dma.hbm_to_vmem [thread:$0]  %s712_s1, 4096, %s29_s27, [#allocation6], %s647_s0, %s647_s0, %s648_s9  }
  0x24   :  { %637 = dma.done.wait [#allocation3], 512  }
  0x25   :  { %638 = vsyncadd [#allocation3], 4294966784 }
  0x26   :  { %639 = dma.done.wait [#allocation6], 4096  }
  0x27   :  { %640 = vsyncadd [#allocation6], 4294963200  ;;  %v533_v0 = vld [vmem:[#allocation5 + $0x40] sm:$0xff]   ;;  %v537_v4 = vld [vmem:[#allocation5 + $0x48] sm:$0xff]   ;;  %s649_s13 = smov [#allocation7]  }
  0x28   :  { %v534_v1 = vld [vmem:[#allocation5 + $0xc0] sm:$0xff]   ;;  %480 = vmatprep.subr.bf16.mxu0 %v533_v0  ;;  %v538_v5 = vld [vmem:[#allocation5 + $0xc8] sm:$0xff]   ;;  %v541_v8 = vld [vmem:[#allocation5 + $0x50] sm:$0xff]   ;;  %s430_s14 = sshll.u32 %s649_s13, 4  ;;  %s431_s14 = int_to_ptr.vmem [resolvable:$true] %s430_s14 }
  0x29   :  { %v535_v2 = vld [vmem:[#allocation5] sm:$0xff]   ;;  %502 = vmatprep.subr.bf16.mxu1 %v534_v1  ;;  %v539_v6 = vld [vmem:[#allocation5 + $0x8] sm:$0xff]   ;;  %v542_v9 = vld [vmem:[#allocation5 + $0xd0] sm:$0xff]   ;;  %s615_s15 = scalar_lea.vmem %s431_s14, 256  ;;  %p620_p3 = scmp.lt.s32.totalorder %s431_s14, %s431_s14 }
  0x2a   :  { %v536_v3 = vld [vmem:[#allocation5 + $0x80] sm:$0xff]   ;;  %481 = vmatpush3.bf16.msra.mxu0 %v535_v2  ;;  %v540_v7 = vld [vmem:[#allocation5 + $0x88] sm:$0xff]   ;;  %v543_v10 = vld [vmem:[#allocation5 + $0x10] sm:$0xff]   ;;  %p616_p2 = scmp.ne.s32.totalorder %s431_s14, %s615_s15  ;;  %p621_p4 = scmp.lt.s32.totalorder %s615_s15, %s615_s15 }
  0x2b   :  { %503 = vmatpush3.bf16.msra.mxu1 %v536_v3  ;;  %482 = vmatprep.subr.bf16.mxu0 %v537_v4  ;;  %v544_v11 = vld [vmem:[#allocation5 + $0x90] sm:$0xff]   ;;  %v545_v12 = vld [vmem:[#allocation5 + $0x58] sm:$0xff]   ;;  %v549_v16 = vld [vmem:[#allocation5 + $0x60] sm:$0xff]  }
  0x2c   :  { %504 = vmatprep.subr.bf16.mxu1 %v538_v5  ;;  %v546_v13 = vld [vmem:[#allocation5 + $0xd8] sm:$0xff]   ;;  %v550_v17 = vld [vmem:[#allocation5 + $0xe0] sm:$0xff]   ;;  %v553_v20 = vld [vmem:[#allocation5 + $0x68] sm:$0xff]   ;;  %p622_p5 = por %p621_p4, %p620_p3 }
  0x2d   :  { %v547_v14 = vld [vmem:[#allocation5 + $0x18] sm:$0xff]   ;;  %v551_v18 = vld [vmem:[#allocation5 + $0x20] sm:$0xff]   ;;  %v554_v21 = vld [vmem:[#allocation5 + $0xe8] sm:$0xff]  }
  0x2e   :  { %483 = vmatpush3.bf16.msra.mxu0 %v539_v6  ;;  %v548_v15 = vld [vmem:[#allocation5 + $0x98] sm:$0xff]   ;;  %v552_v19 = vld [vmem:[#allocation5 + $0xa0] sm:$0xff]   ;;  %v555_v22 = vld [vmem:[#allocation5 + $0x28] sm:$0xff]   ;;  %p623_p6 = pnand %p622_p5, %p616_p2 }
  0x2f   :  { %505 = vmatpush3.bf16.msra.mxu1 %v540_v7  ;;  %484 = vmatprep.subr.bf16.mxu0 %v541_v8  ;;  %v556_v23 = vld [vmem:[#allocation5 + $0xa8] sm:$0xff]   ;;  %v557_v24 = vld [vmem:[#allocation5 + $0x70] sm:$0xff]   ;;  %v561_v28 = vld [vmem:[#allocation5 + $0x78] sm:$0xff]  }
  0x30   :  { %506 = vmatprep.subr.bf16.mxu1 %v542_v9  ;;  %v558_v25 = vld [vmem:[#allocation5 + $0xf0] sm:$0xff]   ;;  %v562_v29 = vld [vmem:[#allocation5 + $0xf8] sm:$0xff]   ;;  %v443_v45 = vld [vmem:[%s713_s2] ss:$0 sm:$0xff] }
  0x31   :  { %v559_v26 = vld [vmem:[#allocation5 + $0x30] sm:$0xff]   ;;  %v563_v30 = vld [vmem:[#allocation5 + $0x38] sm:$0xff]  }
  0x32   :  { %485 = vmatpush3.bf16.msra.mxu0 %v543_v10  ;;  %v560_v27 = vld [vmem:[#allocation5 + $0xb0] sm:$0xff]   ;;  %v564_v31 = vld [vmem:[#allocation5 + $0xb8] sm:$0xff]  }
  0x33   :  { %507 = vmatpush3.bf16.msra.mxu1 %v544_v11  ;;  %486 = vmatprep.subr.bf16.mxu0 %v545_v12  ;;  %v565_v32 = vld [vmem:[#allocation2] ss:$16 sps:$4 sm:$0xff]   ;;  %v567_v33 = vld [vmem:[#allocation2 + $0x4] ss:$16 sps:$4 sm:$0xff]   ;;  %v568_v34 = vld [vmem:[#allocation2 + $0x8] ss:$16 sps:$4 sm:$0xff]  }
  0x34   :  { %508 = vmatprep.subr.bf16.mxu1 %v546_v13  ;;  %v570_v35 = vld [vmem:[#allocation2 + $0xc] ss:$16 sps:$4 sm:$0xff]   ;;  %371 = vmatprep.mubr.bf16.mxu0 %v567_v33 }
  0x35   :  { %412 = vmatprep.mubr.bf16.mxu1 %v570_v35 }
  0x36   :  { %487 = vmatpush3.bf16.msra.mxu0 %v547_v14 }
  0x37   :  { %509 = vmatpush3.bf16.msra.mxu1 %v548_v15  ;;  %488 = vmatprep.subr.bf16.mxu0 %v549_v16 }
  0x38   :  { %510 = vmatprep.subr.bf16.mxu1 %v550_v17 }
  0x3a   :  { %489 = vmatpush3.bf16.msra.mxu0 %v551_v18 }
  0x3b   :  { %511 = vmatpush3.bf16.msra.mxu1 %v552_v19  ;;  %490 = vmatprep.subr.bf16.mxu0 %v553_v20 }
  0x3c   :  { %512 = vmatprep.subr.bf16.mxu1 %v554_v21 }
  0x3e   :  { %491 = vmatpush3.bf16.msra.mxu0 %v555_v22 }
  0x3f   :  { %513 = vmatpush3.bf16.msra.mxu1 %v556_v23  ;;  %492 = vmatprep.subr.bf16.mxu0 %v557_v24 }
  0x40   :  { %514 = vmatprep.subr.bf16.mxu1 %v558_v25 }
  0x42   :  { %493 = vmatpush3.bf16.msra.mxu0 %v559_v26 }
  0x43   :  { %515 = vmatpush3.bf16.msra.mxu1 %v560_v27  ;;  %494 = vmatprep.subr.bf16.mxu0 %v561_v28 }
  0x44   :  { %516 = vmatprep.subr.bf16.mxu1 %v562_v29 }
  0x46   :  { %495 = vmatpush3.bf16.msra.mxu0 %v563_v30 }
  0x47   :  { %517 = vmatpush3.bf16.msra.mxu1 %v564_v31 }
  0x49   :  { %372 = vmatmul.mubr.bf16.vlgmr.msra.gmra.mrb[0].mxu0 %v565_v32 }
  0x4a   :  { %413 = vmatmul.mubr.bf16.vlgmr.msra.gmra.mrb[0].mxu1 %v568_v34 }
 0x11c   :  { %v496_v36 = vpop.f32.mrb[0].mxu0 }
 0x11d   :  { %v518_v37 = vpop.f32.mrb[0].mxu1  ;;  %v497_v38 = vpop.f32.mrb[1].mxu0 }
 0x11e   :  { %v498_v39 = vadd.f32 %v497_v38, %v496_v36  ;;  %v519_v40 = vpop.f32.mrb[1].mxu1  ;;  %v499_v41 = vpop.f32.mrb[2].mxu0 }
 0x11f   :  { %v520_v42 = vadd.f32 %v519_v40, %v518_v37  ;;  %v521_v43 = vpop.f32.mrb[2].mxu1  ;;  %v500_v44 = vpop.f32.mrb[3].mxu0 }
 0x120   :  { %v501_v46 = vadd.f32 %v500_v44, %v499_v41  ;;  %v522_v47 = vpop.f32.mrb[3].mxu1 }
 0x121   :  { %v415_v48 = vadd.f32 %v520_v42, %v498_v39  ;;  %v523_v49 = vadd.f32 %v522_v47, %v521_v43 }
 0x123   :  { %v421_v50 = vadd.f32 %v443_v45, %v415_v48  ;;  %v418_v51 = vadd.f32 %v523_v49, %v501_v46 }
 0x125   :  { %423 = vst [vmem:[#allocation7] sm:$0xff] %v421_v50  ;;  %v422_v52 = vadd.f32 %v443_v45, %v418_v51 }
 0x127   :  { %424 = vst [vmem:[#allocation7 + $0x8] sm:$0xff] %v422_v52 }
 0x128   :  { %626 = shalt.err (!%p623_p6)
}
 0x129   :  { %s627_s17 = scalar_lea.hbm %s714_s3, 256 }
 0x12a   :  { %p628_p7 = scmp.ne.s32.totalorder %s714_s3, %s627_s17  ;;  %p631_p8 = scmp.lt.u32.totalorder %s627_s17, %s714_s3 }
 0x12c   :  { %p633_p9 = pnand %p631_p8, %p628_p7 }
 0x12e   :  { %636 = shalt.err (!%p633_p9)
}
 0x12f   :  { %s650_s22 = smov 128   ;;  %s651_s23 = smov 8  }
 0x130   :  { %436 = dma.vmem_to_hbm [thread:$0]  %s431_s14, 256, %s714_s3, [#allocation4], %s650_s22, %s650_s22, %s651_s23  }
 0x131   :  { %641 = dma.done.wait [#allocation4], 256  }
 0x132   :  { %642 = vsyncadd [#allocation4], 4294967040 }
 0x133   :  { %440 = vsyncpa [#allocation3], 1 }
 0x134   :  { %441 = vsyncpa [#allocation6], 1 }
 0x135   :  { %442 = vsyncpa [#allocation4], 1 }

</bundles_post_ra>
